<compile_context>
chip_gen: v5e
topology: v5e:2x2
jax: 0.10.0
libtpu: 0.0.40
codegen_flags: <defaults>
</compile_context>

<pallas_src>
import functools
import math

import jax
import jax.numpy as jnp
from jax import lax
from jax.experimental import pallas as pl
from jax.experimental.pallas import tpu as pltpu

_EPS = 1e-07
_INV_LN2 = 1.0 / math.log(2.0)


def _make_kernel(*, has_mask: bool, per_row_out: bool, log2: bool,
                 n_rows: int, tile_n: int):
    """Builds the kernel body for one (mask?, reduction) configuration."""

    def kernel(*refs):
        if has_mask:
            logits_ref, tgt_ref, mask_ref, out_ref = refs
        else:
            logits_ref, tgt_ref, out_ref = refs
            mask_ref = None

        logits = logits_ref[...]                 # (TN, C), native dtype
        tgt = tgt_ref[...]                       # (TN, 1), int32

        # One-hot gather of the target probability per row, in the native
        # dtype (exact: exactly one nonzero term per row). VPU compare/mul +
        # XLU lane reduce; only the reduced column is cast to f32.
        col = lax.broadcasted_iota(jnp.int32, logits.shape, 1)      # (TN, C)
        onehot = (col == tgt).astype(logits.dtype)
        p = jnp.sum(onehot * logits, axis=-1, keepdims=True)        # (TN, 1)
        p = p.astype(jnp.float32)

        # Row-validity for the (possibly partial) edge block. Clamp p to 1.0
        # for invalid rows *before* the log so undefined VMEM never feeds it.
        i = pl.program_id(0)
        row = i * tile_n + lax.broadcasted_iota(jnp.int32, p.shape, 0)
        valid = row < n_rows
        p = jnp.where(valid, p, 1.0)

        logp = jnp.log(p + _EPS)
        if log2:
            logp = logp * _INV_LN2
        loss = -logp                                                # (TN, 1)

        if has_mask:
            loss = loss * mask_ref[...]
        # Apply validity last: garbage mask values on invalid rows cannot leak.
        loss = jnp.where(valid, loss, 0.0)

        if per_row_out:
            out_ref[...] = loss                                     # (TN, 1)
        else:
            # Per-block partial sum, broadcast over a lane-dense (8, 128)
            # block -> unmasked stores, ~no VMEM/HBM output traffic.
            s = jnp.sum(loss, axis=0, keepdims=True)                # (1, 1)
            out_ref[...] = jnp.broadcast_to(s, (8, 128)).astype(jnp.float32)

    return kernel


def one_hot_cross_entropy(logits, index_of_target, mask=None,
                          reduction="mean", log2=False):
    assert logits.ndim == 2
    assert index_of_target.ndim == 1
    if reduction not in ("mean", "none"):
        raise ValueError(f"unsupported reduction: {reduction}")

    n, c = logits.shape
    itemsize = jnp.dtype(logits.dtype).itemsize
    n_ceil8 = ((n + 7) // 8) * 8

    has_mask = mask is not None
    per_row_out = (reduction == "none")

    # ---- Generation-aware VMEM budgets -------------------------------------
    try:
        vmem_cap = int(pltpu.get_tpu_info().vmem_capacity_bytes)
    except Exception:
        vmem_cap = 64 * 1024 * 1024          # conservative: v7x per-TC VMEM
    big_vmem = vmem_cap >= 100 * 1024 * 1024  # v5e / v6e (128 MiB physical)
    per_buf_budget = (8 if big_vmem else 5) * 1024 * 1024
    vmem_limit = (64 if big_vmem else 48) * 1024 * 1024

    # ---- Row-tile sizing ----------------------------------------------------
    # Per-row bytes of one buffered copy: the logits row plus the 128-lane
    # padded (TN, 1) side-streams that exist for this configuration.
    row_bytes = c * itemsize + 128 * 4            # logits + int32 targets
    if has_mask:
        row_bytes += 128 * 4                      # f32 mask
    if per_row_out:
        row_bytes += 128 * 4                      # f32 per-row loss output

    tile_n = per_buf_budget // max(row_bytes, 1)
    tile_n = min(tile_n, 8192, n_ceil8)
    tile_n = max(8, (tile_n // 8) * 8)
    # Keep >= 4 grid steps when N allows: feeds both v7x TensorCores via the
    # "parallel" axis and keeps the double-buffered DMA pipeline overlapped.
    if n_ceil8 >= 4 * 8:
        tile_n = min(tile_n, max(8, ((n_ceil8 // 4) // 8) * 8))

    num_blocks = pl.cdiv(n, tile_n)
    grid = (num_blocks,)

    # ---- Operands / specs ---------------------------------------------------
    tgt_col = index_of_target.astype(jnp.int32).reshape(n, 1)
    in_arrays = [logits, tgt_col]
    in_specs = [
        pl.BlockSpec((tile_n, c), lambda i: (i, 0)),
        pl.BlockSpec((tile_n, 1), lambda i: (i, 0)),
    ]
    if has_mask:
        in_arrays.append(mask.astype(jnp.float32).reshape(n, 1))
        in_specs.append(pl.BlockSpec((tile_n, 1), lambda i: (i, 0)))

    if per_row_out:
        out_shape = jax.ShapeDtypeStruct((n, 1), jnp.float32)
        out_specs = pl.BlockSpec((tile_n, 1), lambda i: (i, 0))
    else:
        # One lane-dense (8, 128) partial-sum block per grid step.
        out_shape = jax.ShapeDtypeStruct((num_blocks * 8, 128), jnp.float32)
        out_specs = pl.BlockSpec((8, 128), lambda i: (i, 0))

    kernel = _make_kernel(has_mask=has_mask, per_row_out=per_row_out,
                          log2=log2, n_rows=n, tile_n=tile_n)

    out = pl.pallas_call(
        kernel,
        out_shape=out_shape,
        grid_spec=pltpu.PrefetchScalarGridSpec(
            num_scalar_prefetch=0,
            grid=grid,
            in_specs=in_specs,
            out_specs=out_specs,
        ),
        compiler_params=pltpu.CompilerParams(
            dimension_semantics=("parallel",),
            vmem_limit_bytes=vmem_limit,
        ),
    )(*in_arrays)

    if reduction == "none":
        return out[:, 0]
    # reduction == "mean": PyTorch semantics -- divide by N (not mask.sum()).
    partial = out[0::8, 0]                        # one partial sum per block
    return jnp.sum(partial) / n


def _reference(logits, index_of_target, mask=None, reduction="mean", log2=False):
    lg = jnp.log2(logits + _EPS) if log2 else jnp.log(logits + _EPS)
    loss = -lg[jnp.arange(logits.shape[0]), index_of_target]
    if mask is not None:
        loss = loss * mask.astype(jnp.float32)
    if reduction == "none":
        return loss
    return loss.mean()


if __name__ == "__main__":
    key = jax.random.PRNGKey(0)
    ok = True

    # Small shape matching the module spec, plus a ragged shape that exercises
    # partial edge blocks and a >=4-step grid.
    for (N, C) in ((8, 16), (37, 160)):
        k1, k2, k3, key = jax.random.split(key, 4)
        raw = jax.random.normal(k1, (N, C), dtype=jnp.float32)
        logits = jax.nn.softmax(raw, axis=-1)            # "already softmaxed"
        targets = jax.random.randint(k2, (N,), 0, C, dtype=jnp.int32)
        mask = (jax.random.uniform(k3, (N,)) > 0.3).astype(jnp.float32)

        for reduction in ("mean", "none"):
            for log2 in (False, True):
                for m in (None, mask):
                    out = one_hot_cross_entropy(logits, targets, m,
                                                reduction=reduction, log2=log2)
                    out = jax.block_until_ready(out)
                    ref = _reference(logits, targets, m,
                                     reduction=reduction, log2=log2)
                    if not jnp.allclose(out, ref, atol=1e-5, rtol=1e-5):
                        ok = False
                        print(f"MISMATCH N={N} C={C} red={reduction} "
                              f"log2={log2} mask={m is not None}")

    if ok:
        print("KERNEL_OK")
    else:
        print("KERNEL_MISMATCH")
</pallas_src>

<mosaic_0001>
module attributes {stable_mosaic.version = 11 : i64} {
  func.func @kernel(%arg0: i32, %arg1: memref<8x16xf32, #tpu.memory_space<vmem>>, %arg2: memref<8x1xi32, #tpu.memory_space<vmem>>, %arg3: memref<8x128xf32, #tpu.memory_space<vmem>>) attributes {dimension_semantics = [#tpu.dimension_semantics<parallel>], iteration_bounds = array<i64: 1>, scalar_prefetch = 0 : i64, scratch_operands = 0 : i64, tpu.core_type = #tpu.core_type<tc>, window_params = [{transform_indices = @transform_0, window_bounds = array<i64: 8, 16>}, {transform_indices = @transform_1, window_bounds = array<i64: 8, 1>}, {transform_indices = @transform_2, window_bounds = array<i64: 8, 128>}]} {
    %c0 = arith.constant 0 : index
    %c0_0 = arith.constant 0 : index
    %0 = vector.load %arg1[%c0, %c0_0] : memref<8x16xf32, #tpu.memory_space<vmem>>, vector<8x16xf32>
    %c0_1 = arith.constant 0 : index
    %c0_2 = arith.constant 0 : index
    %1 = vector.load %arg2[%c0_1, %c0_2] : memref<8x1xi32, #tpu.memory_space<vmem>>, vector<8x1xi32>
    %2 = tpu.iota {dimensions = array<i32: 1>} : vector<8x16xi32>
    %3 = vector.broadcast %1 : vector<8x1xi32> to vector<8x16xi32>
    %4 = arith.cmpi eq, %2, %3 : vector<8x16xi32>
    %5 = arith.extui %4 : vector<8x16xi1> to vector<8x16xi32>
    %6 = arith.sitofp %5 : vector<8x16xi32> to vector<8x16xf32>
    %7 = arith.mulf %6, %0 : vector<8x16xf32>
    %cst = arith.constant dense<0.000000e+00> : vector<8xf32>
    %8 = vector.multi_reduction <add>, %7, %cst [1] : vector<8x16xf32> to vector<8xf32>
    %9 = vector.shape_cast %8 : vector<8xf32> to vector<8x1xf32>
    %c8_i32 = arith.constant 8 : i32
    %10 = arith.muli %arg0, %c8_i32 : i32
    %11 = tpu.iota {dimensions = array<i32: 0>} : vector<8x1xi32>
    %12 = vector.broadcast %10 : i32 to vector<8x1xi32>
    %13 = arith.addi %12, %11 : vector<8x1xi32>
    %c8_i32_3 = arith.constant 8 : i32
    %14 = vector.broadcast %c8_i32_3 : i32 to vector<8x1xi32>
    %15 = arith.cmpi slt, %13, %14 : vector<8x1xi32>
    %cst_4 = arith.constant 1.000000e+00 : f32
    %16 = vector.broadcast %cst_4 : f32 to vector<8x1xf32>
    %17 = arith.select %15, %9, %16 : vector<8x1xi1>, vector<8x1xf32>
    %cst_5 = arith.constant 1.000000e-07 : f32
    %18 = vector.broadcast %cst_5 : f32 to vector<8x1xf32>
    %19 = arith.addf %17, %18 : vector<8x1xf32>
    %20 = math.log %19 : vector<8x1xf32>
    %cst_6 = arith.constant 0.000000e+00 : f32
    %21 = vector.broadcast %cst_6 : f32 to vector<8x1xf32>
    %22 = arith.subf %21, %20 : vector<8x1xf32>
    %cst_7 = arith.constant 0.000000e+00 : f32
    %23 = vector.broadcast %cst_7 : f32 to vector<8x1xf32>
    %24 = arith.select %15, %22, %23 : vector<8x1xi1>, vector<8x1xf32>
    %cst_8 = arith.constant dense<0.000000e+00> : vector<1xf32>
    %25 = vector.multi_reduction <add>, %24, %cst_8 [0] : vector<8x1xf32> to vector<1xf32>
    %26 = vector.shape_cast %25 : vector<1xf32> to vector<1x1xf32>
    %27 = vector.shape_cast %26 : vector<1x1xf32> to vector<1x1xf32>
    %28 = vector.broadcast %27 : vector<1x1xf32> to vector<8x128xf32>
    %c0_9 = arith.constant 0 : index
    %c0_10 = arith.constant 0 : index
    %29 = vector.load %arg3[%c0_9, %c0_10] : memref<8x128xf32, #tpu.memory_space<vmem>>, vector<8x128xf32>
    tpu.vector_store %arg3[%c0_9, %c0_10], %28 {strides = array<i32>} : memref<8x128xf32, #tpu.memory_space<vmem>>, vector<8x128xf32>,
    return
  }
  func.func @transform_0(%arg0: i32) -> (i32, i32) {
    %c0_i32 = arith.constant 0 : i32
    %c0_i32_0 = arith.constant 0 : i32
    return %arg0, %c0_i32 : i32, i32
  }
  func.func @transform_1(%arg0: i32) -> (i32, i32) {
    %c0_i32 = arith.constant 0 : i32
    %c0_i32_0 = arith.constant 0 : i32
    return %arg0, %c0_i32 : i32, i32
  }
  func.func @transform_2(%arg0: i32) -> (i32, i32) {
    %c0_i32 = arith.constant 0 : i32
    %c0_i32_0 = arith.constant 0 : i32
    return %arg0, %c0_i32 : i32, i32
  }
}

</mosaic_0001>

<bundles_post_ra>
// kernel: tpu_custom_call.1
= control target key start
LH: loop header
LB: loop body
LE: loop exit
PB: predicated region body
PF: predicated region fallthrough
CT: control target
= control target key end

     0   :  { %s122_s0 = inlined_call_operand.vmem [shape: f32[8,16], index: 0, kind: input, shape index: {}]   ;;  %s123_s1 = inlined_call_operand.vmem [shape: s32[8,1], index: 1, kind: input, shape index: {}]   ;;  %s124_s2 = inlined_call_operand.hbm [shape: f32[8,128], index: 2, kind: output, shape index: {}]  }
   0x1   :  { %v13_v0 = vld [vmem:[%s123_s1] sm:$0xff] }
   0x2   :  { %7 = vsyncpa [#allocation3], 0  ;;  %v95_v1 = vmov 0   ;;  %v14_v2 = vlaneseq  ;;  %v12_v5 = vld [vmem:[%s122_s0] sm:$0xff]  ;;  %v96_v6 = vmov 0.0   ;;  %vm23_vm1 = vcmask 130048  }
   0x3   :  { %66 = vset.pattern.permute.xlu0 %v95_v1  ;;  %s97_s1 = smov [#allocation2]   ;;  %s53_s15 = sshll.u32 %s124_s2, 4  ;;  %s54_s15 = int_to_ptr.hbm [resolvable:$true] %s53_s15 }
   0x4   :  { %17 = vperm.xlu0 %66, %v13_v0   ;;  %v15_v3 = vand.u32 127, %v14_v2  ;;  %s51_s13 = sshll.u32 %s97_s1, 4  ;;  %s52_s13 = int_to_ptr.vmem [resolvable:$true] %s51_s13 }
  0x76   :  { %v18_v4 = vpop.permute.xlu0 %17 }
  0x77   :  { %vm19_vm0 = vcmp.eq.s32.totalorder %v15_v3, %v18_v4 }
  0x78   :  { %v62_v7 = vsel %vm19_vm0, 1.0, %v96_v6 }
  0x79   :  { %v22_v8 = vmul.f32 %v62_v7, %v12_v5 }
  0x7b   :  { %v24_v9 = vsel %vm23_vm1, %v22_v8, 0.0 }
  0x7c   :  { %25 = vadd.xlane.f32.xlu0 %v24_v9 }
  0xef   :  { %v26_v10 = vpop.xlane.xlu0 %25 }
  0xf0   :  { %v34_v11 = vadd.f32 1e-07, %v26_v10 }
  0xf2   :  { %67 = vlog2.f32 %v34_v11 }
  0xf8   :  { %v68_v12 = vpop.eup %67 }
  0xf9   :  { %v36_v13 = vmul.f32 0.6931472, %v68_v12 }
  0xfb   :  { %v37_v14 = vsub.f32 0.0, %v36_v13 }
  0xfd   :  { %v39_v15 = vrot.slane %v37_v14, 4 }
  0xff   :  { %v40_v16 = vadd.f32 %v39_v15, %v37_v14 }
 0x101   :  { %v41_v17 = vrot.slane %v40_v16, 2 }
 0x103   :  { %v42_v18 = vadd.f32 %v41_v17, %v40_v16 }
 0x105   :  { %v43_v19 = vrot.slane %v42_v18, 1 }
 0x107   :  { %v44_v20 = vadd.f32 %v43_v19, %v42_v18 }
 0x109   :  { %45 = vst [vmem:[#allocation2] sm:$0xff] %v44_v20 }
 0x10a   :  { %56 = dma.vmem_to_hbm [thread:$0]  %s52_s13, 128, %s54_s15, [#allocation3]  }
 0x10b   :  { %93 = dma.done.wait [#allocation3], 128  }
 0x10c   :  { %94 = vsyncadd [#allocation3], 4294967168 }
 0x10d   :  { %61 = vsyncpa [#allocation3], 1 }

</bundles_post_ra>
